<compile_context>
chip_gen: v7x
topology: tpu7x:2x2x1
jax: 0.10.0
libtpu: 0.0.40
codegen_flags: <defaults>
</compile_context>

<pallas_src>
import functools

import jax
import jax.numpy as jnp
from jax.experimental import pallas as pl
from jax.experimental.pallas import tpu as pltpu


def _round_up(x, m):
    return (x + m - 1) // m * m


def _pad_rows(x, n):
    if x.shape[0] == n:
        return x
    pad = [(0, n - x.shape[0])] + [(0, 0)] * (x.ndim - 1)
    return jnp.pad(x, pad)


# ---------------------------------------------------------------------------
# Shared per-step math (used by both the single-step and the rollout kernel)
# ---------------------------------------------------------------------------
def _belief_step(acts, sr, h, w_ref, b_ref, *, na, e2, hb, lw):
    """One BeliefUpdate step.

    acts : [bb, 1]  int32   action indices
    sr   : [bb, 2E] bf16    origin|result state embeddings (pre-concatenated)
    h    : [bb, Hb] f32     current beliefs
    w_ref: [rows, lw] bf16  packed weight slab
    b_ref: [4, lw]   f32    packed bias slab
    returns new beliefs [bb, Hb] f32
    """
    f32 = jnp.float32
    bf16 = jnp.bfloat16
    bb = acts.shape[0]

    # in-kernel one-hot (actions outside [0, num_moves) simply match nothing /
    # hit zero-padded weight rows, identical to the reference's zero columns)
    oh = (jax.lax.broadcasted_iota(jnp.int32, (bb, na), 1) == acts).astype(bf16)

    # static, 16-row-aligned slices of the packed bf16 weight slab
    off = 0
    w1a = w_ref[off:off + na, :]; off += na       # [na, lw]
    w1sr = w_ref[off:off + e2, :]; off += e2      # [2E, lw]
    w2 = w_ref[off:off + lw, :]; off += lw        # [lw, lw]  (rows zero-padded)
    w3i = w_ref[off:off + lw, :]; off += lw       # [lw, lw]  (w3 @ [wir|wiz|win])
    wh = w_ref[off:off + hb, :]                   # [Hb, lw]  ([whr|whz|whn])

    b1 = b_ref[0:1, :]
    b2 = b_ref[1:2, :]
    b3i = b_ref[2:3, :]
    bh = b_ref[3:4, :]

    # input_trans MLP: layer 1 is two bf16 matmuls (one-hot block + state block)
    pre1 = (jnp.dot(oh, w1a, preferred_element_type=f32)
            + jnp.dot(sr, w1sr, preferred_element_type=f32)
            + b1)
    a1 = jnp.maximum(pre1, 0.0).astype(bf16)                       # [bb, lw]
    a2 = jnp.maximum(jnp.dot(a1, w2, preferred_element_type=f32) + b2,
                     0.0).astype(bf16)                             # [bb, lw]

    # GRUCell: one fused input-gate matmul (w3 pre-folded) + one hidden-gate matmul
    gi = jnp.dot(a2, w3i, preferred_element_type=f32) + b3i        # [bb, lw] f32
    gh = jnp.dot(h.astype(bf16), wh, preferred_element_type=f32) + bh

    s = gi + gh
    rz = jax.nn.sigmoid(s[:, 0:2 * hb])                            # fused r|z
    r = rz[:, 0:hb]
    z = rz[:, hb:2 * hb]
    n = jnp.tanh(gi[:, 2 * hb:3 * hb] + r * gh[:, 2 * hb:3 * hb])
    return (1.0 - z) * n + z * h                                   # f32


# ---------------------------------------------------------------------------
# Kernels
# ---------------------------------------------------------------------------
def belief_update_kernel(act_ref, sr_ref, h_ref, w_ref, b_ref, o_ref,
                         *, na, e2, hb, lw):
    o_ref[...] = _belief_step(act_ref[...], sr_ref[...], h_ref[...],
                              w_ref, b_ref, na=na, e2=e2, hb=hb, lw=lw
                              ).astype(o_ref.dtype)


def belief_rollout_kernel(act_ref, sr_ref, h0_ref, w_ref, b_ref, o_ref,
                          *, na, e2, hb, lw):
    # Beliefs live in the output VMEM block (constant index_map) across all T
    # grid steps; weights/biases are likewise resident.
    @pl.when(pl.program_id(0) == 0)
    def _():
        o_ref[...] = h0_ref[...]

    o_ref[...] = _belief_step(act_ref[0], sr_ref[0], o_ref[...],
                              w_ref, b_ref, na=na, e2=e2, hb=hb, lw=lw
                              ).astype(o_ref.dtype)


# ---------------------------------------------------------------------------
# Host-side parameter packing (done once, outside the hot path; fold in f32)
# ---------------------------------------------------------------------------
def pack_params(params, num_moves, emb_dim_state, emb_dim_belief, hidden_dim_update):
    (w1, b1, w2, b2, w3, b3,
     wir, wiz, win, whr, whz, whn,
     bir, biz, bin_, bhr, bhz, bhn) = params

    e = emb_dim_state
    hb = emb_dim_belief
    h4 = 4 * hidden_dim_update
    na = _round_up(num_moves, 16)            # 16-row aligned for bf16 sublane pack
    lw = _round_up(max(h4, 3 * hb), 128)
    assert e % 8 == 0 and hb % 8 == 0 and h4 % 8 == 0, "dims must be multiples of 8"

    def pad_block(w, rows=None):
        w = jnp.pad(w, ((0, 0), (0, lw - w.shape[1])))
        if rows is not None and rows > w.shape[0]:
            w = jnp.pad(w, ((0, rows - w.shape[0]), (0, 0)))
        return w

    # split first layer by input block; pad the one-hot block rows
    w1a = jnp.pad(w1[:num_moves], ((0, na - num_moves), (0, 0)))   # [na, h4]
    w1sr = w1[num_moves:]                                          # [2E, h4]

    # fuse GRU gates (PyTorch order r, z, n); fold w3 into the input path in f32
    wi = jnp.concatenate([wir, wiz, win], axis=1)                  # [hu, 3Hb]
    whx = jnp.concatenate([whr, whz, whn], axis=1)                 # [Hb, 3Hb]
    w3i = w3 @ wi                                                  # [h4, 3Hb]
    b3i = b3 @ wi + jnp.concatenate([bir, biz, bin_], axis=1)
    bh = jnp.concatenate([bhr, bhz, bhn], axis=1)

    packed_w = jnp.concatenate(
        [pad_block(w1a), pad_block(w1sr),
         pad_block(w2, rows=lw), pad_block(w3i, rows=lw),
         pad_block(whx)], axis=0).astype(jnp.bfloat16)
    packed_b = jnp.concatenate(
        [pad_block(b1), pad_block(b2), pad_block(b3i), pad_block(bh)],
        axis=0).astype(jnp.float32)

    meta = dict(na=na, e2=2 * e, hb=hb, lw=lw)
    return packed_w, packed_b, meta


# ---------------------------------------------------------------------------
# Wrappers
# ---------------------------------------------------------------------------
def belief_update(beliefs, origin_states, result_states, actions,
                  packed_w, packed_b, *, na, e2, hb, lw, block_b=1024):
    """Single step: matches BeliefUpdateModule.forward."""
    B = beliefs.shape[0]
    rows = packed_w.shape[0]

    B8 = _round_up(B, 8)
    bb = min(B8, block_b)
    Bp = _round_up(B, bb)                    # grid * bb == Bp: no OOB compute
    grid = (Bp // bb,)

    sr = jnp.concatenate([origin_states, result_states], axis=1).astype(jnp.bfloat16)
    acts2d = actions.astype(jnp.int32).reshape(B, 1)

    acts2d = _pad_rows(acts2d, Bp)
    sr = _pad_rows(sr, Bp)
    h = _pad_rows(beliefs, Bp)

    kernel = functools.partial(belief_update_kernel, na=na, e2=e2, hb=hb, lw=lw)
    out = pl.pallas_call(
        kernel,
        out_shape=jax.ShapeDtypeStruct((Bp, hb), beliefs.dtype),
        grid=grid,
        in_specs=[
            pl.BlockSpec((bb, 1), lambda i: (i, 0)),      # actions (int32)
            pl.BlockSpec((bb, e2), lambda i: (i, 0)),     # origin|result (bf16)
            pl.BlockSpec((bb, hb), lambda i: (i, 0)),     # beliefs (f32)
            pl.BlockSpec((rows, lw), lambda i: (0, 0)),   # packed weights (resident)
            pl.BlockSpec((4, lw), lambda i: (0, 0)),      # packed biases (resident)
        ],
        out_specs=pl.BlockSpec((bb, hb), lambda i: (i, 0)),
        compiler_params=pltpu.CompilerParams(
            dimension_semantics=("parallel",)),
    )(acts2d, sr, h, packed_w, packed_b)
    return out[:B]


def belief_update_rollout(beliefs0, origin_states, result_states, actions,
                          packed_w, packed_b, *, na, e2, hb, lw):
    """T-step rollout fused in one kernel: beliefs carried in VMEM across steps.

    origin_states/result_states: [T, B, E]; actions: [T, B]; beliefs0: [B, Hb].
    Returns the beliefs after T sequential updates.
    """
    T, B = actions.shape[0], beliefs0.shape[0]
    assert B % 8 == 0, "pad batch to a multiple of 8 for the rollout path"
    rows = packed_w.shape[0]

    sr = jnp.concatenate([origin_states, result_states], axis=-1).astype(jnp.bfloat16)
    acts = actions.astype(jnp.int32).reshape(T, B, 1)

    kernel = functools.partial(belief_rollout_kernel, na=na, e2=e2, hb=hb, lw=lw)
    return pl.pallas_call(
        kernel,
        out_shape=jax.ShapeDtypeStruct((B, hb), beliefs0.dtype),
        grid=(T,),
        in_specs=[
            pl.BlockSpec((1, B, 1), lambda t: (t, 0, 0)),    # actions[t]
            pl.BlockSpec((1, B, e2), lambda t: (t, 0, 0)),   # origin|result[t]
            pl.BlockSpec((B, hb), lambda t: (0, 0)),         # initial beliefs
            pl.BlockSpec((rows, lw), lambda t: (0, 0)),      # weights (resident)
            pl.BlockSpec((4, lw), lambda t: (0, 0)),         # biases (resident)
        ],
        out_specs=pl.BlockSpec((B, hb), lambda t: (0, 0)),   # beliefs carried here
        compiler_params=pltpu.CompilerParams(
            dimension_semantics=("arbitrary",)),
    )(acts, sr, beliefs0, packed_w, packed_b)


# ---------------------------------------------------------------------------
# Synthetic parameters + pure-JAX f32 reference (mirrors the PyTorch module)
# ---------------------------------------------------------------------------
def init_params(key, num_moves, emb_dim_state, emb_dim_belief, hidden_dim_update):
    """Linear weights stored transposed ([in, out]); GRUCell weights split per gate."""
    din = num_moves + 2 * emb_dim_state
    h4 = 4 * hidden_dim_update
    hu = hidden_dim_update
    hb = emb_dim_belief

    def uniform(k, shape, fan_in):
        bound = 1.0 / jnp.sqrt(jnp.asarray(fan_in, jnp.float32))
        return jax.random.uniform(k, shape, jnp.float32, -bound, bound)

    ks = jax.random.split(key, 18)
    w1 = uniform(ks[0], (din, h4), din)
    b1 = uniform(ks[1], (1, h4), din)
    w2 = uniform(ks[2], (h4, h4), h4)
    b2 = uniform(ks[3], (1, h4), h4)
    w3 = uniform(ks[4], (h4, hu), h4)
    b3 = uniform(ks[5], (1, hu), h4)
    wir = uniform(ks[6], (hu, hb), hb)
    wiz = uniform(ks[7], (hu, hb), hb)
    win = uniform(ks[8], (hu, hb), hb)
    whr = uniform(ks[9], (hb, hb), hb)
    whz = uniform(ks[10], (hb, hb), hb)
    whn = uniform(ks[11], (hb, hb), hb)
    bir = uniform(ks[12], (1, hb), hb)
    biz = uniform(ks[13], (1, hb), hb)
    bin_ = uniform(ks[14], (1, hb), hb)
    bhr = uniform(ks[15], (1, hb), hb)
    bhz = uniform(ks[16], (1, hb), hb)
    bhn = uniform(ks[17], (1, hb), hb)
    return (w1, b1, w2, b2, w3, b3,
            wir, wiz, win, whr, whz, whn,
            bir, biz, bin_, bhr, bhz, bhn)


def reference_forward(beliefs, origin_states, result_states, actions, params, num_moves):
    (w1, b1, w2, b2, w3, b3,
     wir, wiz, win, whr, whz, whn,
     bir, biz, bin_, bhr, bhz, bhn) = params
    action_emb = jax.nn.one_hot(actions, num_moves, dtype=beliefs.dtype)
    x = jnp.concatenate([action_emb, origin_states, result_states], axis=1)
    a1 = jax.nn.relu(x @ w1 + b1)
    a2 = jax.nn.relu(a1 @ w2 + b2)
    u = a2 @ w3 + b3
    r = jax.nn.sigmoid(u @ wir + bir + beliefs @ whr + bhr)
    z = jax.nn.sigmoid(u @ wiz + biz + beliefs @ whz + bhz)
    n = jnp.tanh(u @ win + bin_ + r * (beliefs @ whn + bhn))
    return (1.0 - z) * n + z * beliefs


if __name__ == "__main__":
    batch = 8
    T = 4
    num_moves = 6
    emb_dim_state = 16
    emb_dim_belief = 32
    hidden_dim_update = 32

    key = jax.random.PRNGKey(0)
    k_b, k_o, k_r, k_a, k_p, k_os, k_rs, k_as = jax.random.split(key, 8)

    beliefs = jax.random.normal(k_b, (batch, emb_dim_belief), jnp.float32)
    origin_states = jax.random.normal(k_o, (batch, emb_dim_state), jnp.float32)
    result_states = jax.random.normal(k_r, (batch, emb_dim_state), jnp.float32)
    actions = jax.random.randint(k_a, (batch,), 0, num_moves, jnp.int32)

    params = init_params(k_p, num_moves, emb_dim_state, emb_dim_belief,
                         hidden_dim_update)
    packed_w, packed_b, meta = pack_params(
        params, num_moves, emb_dim_state, emb_dim_belief, hidden_dim_update)

    # ---- single step vs f32 reference (bf16 MXU path -> loose tolerance) ----
    fwd = jax.jit(functools.partial(belief_update, **meta))
    out = fwd(beliefs, origin_states, result_states, actions, packed_w, packed_b)
    out = jax.block_until_ready(out)
    ref = reference_forward(beliefs, origin_states, result_states, actions,
                            params, num_moves)
    assert out.shape == (batch, emb_dim_belief)
    err1 = float(jnp.max(jnp.abs(out - ref)))
    assert err1 < 5e-2, err1

    # ---- fused T-step rollout (time loop inside the kernel) ----
    origin_seq = jax.random.normal(k_os, (T, batch, emb_dim_state), jnp.float32)
    result_seq = jax.random.normal(k_rs, (T, batch, emb_dim_state), jnp.float32)
    actions_seq = jax.random.randint(k_as, (T, batch), 0, num_moves, jnp.int32)

    roll = jax.jit(functools.partial(belief_update_rollout, **meta))
    out_roll = roll(beliefs, origin_seq, result_seq, actions_seq, packed_w, packed_b)
    out_roll = jax.block_until_ready(out_roll)

    # chained single-step kernel (same numerics, different structure)
    h_chain = beliefs
    h_ref_chain = beliefs
    for t in range(T):
        h_chain = fwd(h_chain, origin_seq[t], result_seq[t], actions_seq[t],
                      packed_w, packed_b)
        h_ref_chain = reference_forward(h_ref_chain, origin_seq[t], result_seq[t],
                                        actions_seq[t], params, num_moves)
    h_chain = jax.block_until_ready(h_chain)

    err2 = float(jnp.max(jnp.abs(out_roll - h_chain)))     # rollout == chained kernel
    err3 = float(jnp.max(jnp.abs(out_roll - h_ref_chain)))  # rollout ~= f32 reference
    assert err2 < 1e-4, err2
    assert err3 < 1e-1, err3

    print("KERNEL_OK")
</pallas_src>

<mosaic_0001>
module attributes {stable_mosaic.version = 11 : i64} {
  func.func @belief_update_kernel(%arg0: i32, %arg1: memref<8x1xi32, #tpu.memory_space<vmem>>, %arg2: memref<8x32xbf16, #tpu.memory_space<vmem>>, %arg3: memref<8x32xf32, #tpu.memory_space<vmem>>, %arg4: memref<336x128xbf16, #tpu.memory_space<vmem>>, %arg5: memref<4x128xf32, #tpu.memory_space<vmem>>, %arg6: memref<8x32xf32, #tpu.memory_space<vmem>>) attributes {dimension_semantics = [#tpu.dimension_semantics<parallel>], iteration_bounds = array<i64: 1>, scalar_prefetch = 0 : i64, scratch_operands = 0 : i64, tpu.core_type = #tpu.core_type<tc>, window_params = [{transform_indices = @transform_0, window_bounds = array<i64: 8, 1>}, {transform_indices = @transform_1, window_bounds = array<i64: 8, 32>}, {transform_indices = @transform_2, window_bounds = array<i64: 8, 32>}, {pipeline_mode = #tpu.pipeline_mode<synchronous>, transform_indices = @transform_3, window_bounds = array<i64: 336, 128>}, {pipeline_mode = #tpu.pipeline_mode<synchronous>, transform_indices = @transform_4, window_bounds = array<i64: 4, 128>}, {transform_indices = @transform_5, window_bounds = array<i64: 8, 32>}]} {
    %c0 = arith.constant 0 : index
    %c0_0 = arith.constant 0 : index
    %0 = vector.load %arg1[%c0, %c0_0] : memref<8x1xi32, #tpu.memory_space<vmem>>, vector<8x1xi32>
    %c0_1 = arith.constant 0 : index
    %c0_2 = arith.constant 0 : index
    %1 = vector.load %arg2[%c0_1, %c0_2] : memref<8x32xbf16, #tpu.memory_space<vmem>>, vector<8x32xbf16>
    %c0_3 = arith.constant 0 : index
    %c0_4 = arith.constant 0 : index
    %2 = vector.load %arg3[%c0_3, %c0_4] : memref<8x32xf32, #tpu.memory_space<vmem>>, vector<8x32xf32>
    %3 = tpu.iota {dimensions = array<i32: 1>} : vector<8x16xi32>
    %4 = vector.broadcast %0 : vector<8x1xi32> to vector<8x16xi32>
    %5 = arith.cmpi eq, %3, %4 : vector<8x16xi32>
    %6 = arith.extui %5 : vector<8x16xi1> to vector<8x16xi32>
    %7 = arith.sitofp %6 : vector<8x16xi32> to vector<8x16xf32>
    %8 = arith.truncf %7 : vector<8x16xf32> to vector<8x16xbf16>
    %c0_5 = arith.constant 0 : index
    %c0_6 = arith.constant 0 : index
    %9 = vector.load %arg4[%c0_5, %c0_6] : memref<336x128xbf16, #tpu.memory_space<vmem>>, vector<16x128xbf16>
    %c16 = arith.constant 16 : index
    %c0_7 = arith.constant 0 : index
    %10 = vector.load %arg4[%c16, %c0_7] : memref<336x128xbf16, #tpu.memory_space<vmem>>, vector<32x128xbf16>
    %c48 = arith.constant 48 : index
    %c0_8 = arith.constant 0 : index
    %11 = vector.load %arg4[%c48, %c0_8] : memref<336x128xbf16, #tpu.memory_space<vmem>>, vector<128x128xbf16>
    %c176 = arith.constant 176 : index
    %c0_9 = arith.constant 0 : index
    %12 = vector.load %arg4[%c176, %c0_9] : memref<336x128xbf16, #tpu.memory_space<vmem>>, vector<128x128xbf16>
    %c304 = arith.constant 304 : index
    %c0_10 = arith.constant 0 : index
    %13 = vector.load %arg4[%c304, %c0_10] : memref<336x128xbf16, #tpu.memory_space<vmem>>, vector<32x128xbf16>
    %c0_11 = arith.constant 0 : index
    %c0_12 = arith.constant 0 : index
    %14 = vector.load %arg5[%c0_11, %c0_12] : memref<4x128xf32, #tpu.memory_space<vmem>>, vector<1x128xf32>
    %c1 = arith.constant 1 : index
    %c0_13 = arith.constant 0 : index
    %15 = vector.load %arg5[%c1, %c0_13] : memref<4x128xf32, #tpu.memory_space<vmem>>, vector<1x128xf32>
    %c2 = arith.constant 2 : index
    %c0_14 = arith.constant 0 : index
    %16 = vector.load %arg5[%c2, %c0_14] : memref<4x128xf32, #tpu.memory_space<vmem>>, vector<1x128xf32>
    %c3 = arith.constant 3 : index
    %c0_15 = arith.constant 0 : index
    %17 = vector.load %arg5[%c3, %c0_15] : memref<4x128xf32, #tpu.memory_space<vmem>>, vector<1x128xf32>
    %cst = arith.constant dense<0.000000e+00> : vector<8x128xf32>
    %18 = tpu.matmul %8, %9, %cst {dimension_numbers = #tpu.dot_dimension_numbers<[1], [0], [0], [1], [0, 0, 1, 1], [], []>} : vector<8x16xbf16>, vector<16x128xbf16>, vector<8x128xf32> -> vector<8x128xf32>
    %cst_16 = arith.constant dense<0.000000e+00> : vector<8x128xf32>
    %19 = tpu.matmul %1, %10, %cst_16 {dimension_numbers = #tpu.dot_dimension_numbers<[1], [0], [0], [1], [0, 0, 1, 1], [], []>} : vector<8x32xbf16>, vector<32x128xbf16>, vector<8x128xf32> -> vector<8x128xf32>
    %20 = arith.addf %18, %19 : vector<8x128xf32>
    %21 = vector.broadcast %14 : vector<1x128xf32> to vector<8x128xf32>
    %22 = arith.addf %20, %21 : vector<8x128xf32>
    %cst_17 = arith.constant 0.000000e+00 : f32
    %23 = vector.broadcast %cst_17 : f32 to vector<8x128xf32>
    %24 = arith.maximumf %22, %23 : vector<8x128xf32>
    %25 = arith.truncf %24 : vector<8x128xf32> to vector<8x128xbf16>
    %cst_18 = arith.constant dense<0.000000e+00> : vector<8x128xf32>
    %26 = tpu.matmul %25, %11, %cst_18 {dimension_numbers = #tpu.dot_dimension_numbers<[1], [0], [0], [1], [0, 0, 1, 1], [], []>} : vector<8x128xbf16>, vector<128x128xbf16>, vector<8x128xf32> -> vector<8x128xf32>
    %27 = vector.broadcast %15 : vector<1x128xf32> to vector<8x128xf32>
    %28 = arith.addf %26, %27 : vector<8x128xf32>
    %cst_19 = arith.constant 0.000000e+00 : f32
    %29 = vector.broadcast %cst_19 : f32 to vector<8x128xf32>
    %30 = arith.maximumf %28, %29 : vector<8x128xf32>
    %31 = arith.truncf %30 : vector<8x128xf32> to vector<8x128xbf16>
    %cst_20 = arith.constant dense<0.000000e+00> : vector<8x128xf32>
    %32 = tpu.matmul %31, %12, %cst_20 {dimension_numbers = #tpu.dot_dimension_numbers<[1], [0], [0], [1], [0, 0, 1, 1], [], []>} : vector<8x128xbf16>, vector<128x128xbf16>, vector<8x128xf32> -> vector<8x128xf32>
    %33 = vector.broadcast %16 : vector<1x128xf32> to vector<8x128xf32>
    %34 = arith.addf %32, %33 : vector<8x128xf32>
    %35 = arith.truncf %2 : vector<8x32xf32> to vector<8x32xbf16>
    %cst_21 = arith.constant dense<0.000000e+00> : vector<8x128xf32>
    %36 = tpu.matmul %35, %13, %cst_21 {dimension_numbers = #tpu.dot_dimension_numbers<[1], [0], [0], [1], [0, 0, 1, 1], [], []>} : vector<8x32xbf16>, vector<32x128xbf16>, vector<8x128xf32> -> vector<8x128xf32>
    %37 = vector.broadcast %17 : vector<1x128xf32> to vector<8x128xf32>
    %38 = arith.addf %36, %37 : vector<8x128xf32>
    %39 = arith.addf %34, %38 : vector<8x128xf32>
    %40 = vector.extract_strided_slice %39 {offsets = [0, 0], sizes = [8, 64], strides = [1, 1]} : vector<8x128xf32> to vector<8x64xf32>
    %41 = arith.negf %40 : vector<8x64xf32>
    %42 = math.exp %41 : vector<8x64xf32>
    %cst_22 = arith.constant 1.000000e+00 : f32
    %43 = vector.broadcast %cst_22 : f32 to vector<8x64xf32>
    %44 = arith.addf %43, %42 : vector<8x64xf32>
    %45 = arith.divf %43, %44 : vector<8x64xf32>
    %46 = vector.extract_strided_slice %45 {offsets = [0, 0], sizes = [8, 32], strides = [1, 1]} : vector<8x64xf32> to vector<8x32xf32>
    %47 = vector.extract_strided_slice %45 {offsets = [0, 32], sizes = [8, 32], strides = [1, 1]} : vector<8x64xf32> to vector<8x32xf32>
    %48 = vector.extract_strided_slice %34 {offsets = [0, 64], sizes = [8, 32], strides = [1, 1]} : vector<8x128xf32> to vector<8x32xf32>
    %49 = vector.extract_strided_slice %38 {offsets = [0, 64], sizes = [8, 32], strides = [1, 1]} : vector<8x128xf32> to vector<8x32xf32>
    %50 = arith.mulf %46, %49 : vector<8x32xf32>
    %51 = arith.addf %48, %50 : vector<8x32xf32>
    %52 = math.tanh %51 : vector<8x32xf32>
    %cst_23 = arith.constant 1.000000e+00 : f32
    %53 = vector.broadcast %cst_23 : f32 to vector<8x32xf32>
    %54 = arith.subf %53, %47 : vector<8x32xf32>
    %55 = arith.mulf %54, %52 : vector<8x32xf32>
    %56 = arith.mulf %47, %2 : vector<8x32xf32>
    %57 = arith.addf %55, %56 : vector<8x32xf32>
    %c0_24 = arith.constant 0 : index
    %c0_25 = arith.constant 0 : index
    %58 = vector.load %arg6[%c0_24, %c0_25] : memref<8x32xf32, #tpu.memory_space<vmem>>, vector<8x32xf32>
    tpu.vector_store %arg6[%c0_24, %c0_25], %57 {strides = array<i32>} : memref<8x32xf32, #tpu.memory_space<vmem>>, vector<8x32xf32>,
    return
  }
  func.func @transform_0(%arg0: i32) -> (i32, i32) {
    %c0_i32 = arith.constant 0 : i32
    %c0_i32_0 = arith.constant 0 : i32
    return %arg0, %c0_i32 : i32, i32
  }
  func.func @transform_1(%arg0: i32) -> (i32, i32) {
    %c0_i32 = arith.constant 0 : i32
    %c0_i32_0 = arith.constant 0 : i32
    return %arg0, %c0_i32 : i32, i32
  }
  func.func @transform_2(%arg0: i32) -> (i32, i32) {
    %c0_i32 = arith.constant 0 : i32
    %c0_i32_0 = arith.constant 0 : i32
    return %arg0, %c0_i32 : i32, i32
  }
  func.func @transform_3(%arg0: i32) -> (i32, i32) {
    %c0_i32 = arith.constant 0 : i32
    %c0_i32_0 = arith.constant 0 : i32
    %c0_i32_1 = arith.constant 0 : i32
    return %c0_i32, %c0_i32_0 : i32, i32
  }
  func.func @transform_4(%arg0: i32) -> (i32, i32) {
    %c0_i32 = arith.constant 0 : i32
    %c0_i32_0 = arith.constant 0 : i32
    %c0_i32_1 = arith.constant 0 : i32
    return %c0_i32, %c0_i32_0 : i32, i32
  }
  func.func @transform_5(%arg0: i32) -> (i32, i32) {
    %c0_i32 = arith.constant 0 : i32
    %c0_i32_0 = arith.constant 0 : i32
    return %arg0, %c0_i32 : i32, i32
  }
}

</mosaic_0001>

<bundles_post_ra>
// kernel: belief_update.1
= control target key start
LH: loop header
LB: loop body
LE: loop exit
PB: predicated region body
PF: predicated region fallthrough
CT: control target
= control target key end

     0   :  { %10 = vsyncpa [#allocation3], 0  ;;  %s829_s0 = inlined_call_operand.vmem [shape: s32[8,1], index: 0, kind: input, shape index: {}]   ;;  %s830_s1 = inlined_call_operand.vmem [shape: bf16[8,32], index: 1, kind: input, shape index: {}]   ;;  %s831_s2 = inlined_call_operand.vmem [shape: f32[8,32], index: 2, kind: input, shape index: {}]   ;;  %s832_s3 = inlined_call_operand.hbm [shape: bf16[336,128], index: 3, kind: input, shape index: {}]   ;;  %s833_s4 = inlined_call_operand.vmem [shape: f32[4,128], index: 4, kind: input, shape index: {}]   ;;  %s834_s5 = inlined_call_operand.hbm [shape: f32[8,32], index: 5, kind: output, shape index: {}]  }
   0x1   :  { %11 = vsyncpa [#allocation4], 0  ;;  %s706_s18 = smov [#allocation2]   ;;  %s658_s22 = scalar_lea.hbm %s832_s3, 2688 }
   0x2   :  { %s23_s19 = sshll.u32 %s706_s18, 4  ;;  %p659_p0 = scmp.ne.s32.totalorder %s832_s3, %s658_s22  ;;  %s24_s19 = int_to_ptr.vmem [resolvable:$true] %s23_s19 }
   0x3   :  { %p662_p1 = scmp.lt.u32.totalorder %s658_s22, %s832_s3 }
   0x5   :  { %p664_p2 = pnand %p662_p1, %p659_p0 }
   0x7   :  { %667 = shalt.err (!%p664_p2)
}
   0x8   :  { %s668_s27 = scalar_lea.vmem %s24_s19, 2688  ;;  %p673_p4 = scmp.lt.s32.totalorder %s24_s19, %s24_s19 }
   0x9   :  { %p669_p3 = scmp.ne.s32.totalorder %s24_s19, %s668_s27  ;;  %p674_p5 = scmp.lt.s32.totalorder %s668_s27, %s668_s27 }
   0xb   :  { %p675_p6 = por %p674_p5, %p673_p4 }
   0xd   :  { %p676_p7 = pnand %p675_p6, %p669_p3 }
   0xf   :  { %679 = shalt.err (!%p676_p7)
}
  0x10   :  { %s707_s28 = smov 64   ;;  %s708_s29 = smov 4  }
  0x11   :  { %29 = dma.hbm_to_vmem [thread:$0]  %s832_s3, 2688, %s24_s19, [#allocation3], %s707_s28, %s707_s28, %s708_s29  }
  0x12   :  { %702 = dma.done.wait [#allocation3], 2688  }
  0x13   :  { %703 = vsyncadd [#allocation3], 4294964608  ;;  %v709_v0 = vmov 0   ;;  %v710_v1 = vmov 0.0   ;;  %v36_v2 = vld [vmem:[%s829_s0] sm:$0xff]  ;;  %v631_v3 = vld [vmem:[#allocation2 + $0x8] sm:$0xff]   ;;  %v39_v7 = vlaneseq }
  0x14   :  { %630 = vset.pattern.permute.xlu0 %v709_v0  ;;  %559 = vmatprep.subr.bf16.mxu0 %v710_v1  ;;  %vm711_vm0 = vmmov 0   ;;  %v632_v4 = vld [vmem:[#allocation2 + $0x10] sm:$0xff]   ;;  %v633_v5 = vld [vmem:[#allocation2] sm:$0xff]   ;;  %vm106_vm1 = vcmask 261120   ;;  %vm156_vm3 = vcmask 130048   ;;  %v634_v11 = vld [vmem:[#allocation2 + $0x18] sm:$0xff]  }
  0x15   :  { %567 = vmatprep.subr.bf16.mxu1 %v710_v1  ;;  %42 = vperm.xlu0 %630, %v36_v2   ;;  %v37_v6 = vld [vmem:[%s830_s1] sm:$0xf]  ;;  %v40_v8 = vand.u32 127, %v39_v7  ;;  %v636_v14 = vld [vmem:[#allocation2 + $0x28] sm:$0xff]   ;;  %v637_v15 = vld [vmem:[#allocation2 + $0x30] sm:$0xff]   ;;  %s712_s15 = smov 32  }
  0x16   :  { %563 = vmatprep.mubr.msk.bf16.mxu0 %vm711_vm0, %v710_v1  ;;  %569 = vmatprep.mubr.msk.bf16.mxu1 %vm711_vm0, %v710_v1  ;;  %v635_v13 = vld [vmem:[#allocation2 + $0x20] sm:$0xff]   ;;  %v638_v16 = vld [vmem:[#allocation2 + $0x38] sm:$0xff]   ;;  %v640_v18 = vld [vmem:[#allocation2 + $0x48] sm:$0xff]   ;;  %s714_s18 = smov [#allocation5]  }
  0x17   :  { %560 = vmatpush3.bf16.msra.mxu0 %v631_v3  ;;  %568 = vmatpush3.bf16.msra.mxu1 %v633_v5  ;;  %v639_v17 = vld [vmem:[#allocation2 + $0x40] sm:$0xff]   ;;  %v641_v19 = vld [vmem:[#allocation2 + $0x50] sm:$0xff]   ;;  %v644_v24 = vld [vmem:[#allocation2 + $0x58] sm:$0xff]   ;;  %s494_s19 = sshll.u32 %s714_s18, 4  ;;  %s495_s19 = int_to_ptr.vmem [resolvable:$true] %s494_s19 }
  0x18   :  { %561 = vmatprep.subr.bf16.mxu0 %v710_v1  ;;  %573 = vmatprep.subr.bf16.mxu1 %v710_v1  ;;  %v645_v25 = vld [vmem:[#allocation2 + $0x60] sm:$0xff]   ;;  %v646_v26 = vld [vmem:[#allocation2 + $0x68] sm:$0xff]   ;;  %v647_v27 = vld [vmem:[#allocation2 + $0x70] sm:$0xff]   ;;  %s680_s20 = scalar_lea.vmem %s495_s19, 128  ;;  %p685_p9 = scmp.lt.s32.totalorder %s495_s19, %s495_s19 }
  0x19   :  { %v648_v28 = vld [vmem:[#allocation2 + $0x78] sm:$0xff]   ;;  %v649_v29 = vld [vmem:[#allocation2 + $0x80] sm:$0xff]   ;;  %v650_v43 = vld [vmem:[#allocation2 + $0x88] sm:$0xff]   ;;  %p681_p8 = scmp.ne.s32.totalorder %s495_s19, %s680_s20  ;;  %p686_p10 = scmp.lt.s32.totalorder %s680_s20, %s680_s20 }
  0x1a   :  { %v509_v30 = vld [vmem:[%s833_s4] ss:$0 sm:$0xff]  ;;  %v642_v38 = vld [vmem:[#allocation2 + $0x98] sm:$0xff]   ;;  %v651_v44 = vld [vmem:[#allocation2 + $0x90] sm:$0xff]  }
  0x1b   :  { %562 = vmatpush3.bf16.msra.mxu0 %v632_v4  ;;  %v643_v40 = vld [vmem:[#allocation2 + $0xa0] sm:$0xff]   ;;  %p687_p11 = por %p686_p10, %p685_p9 }
  0x1c   :  { %593 = vmatprep.subr.bf16.mxu0 %v710_v1  ;;  %v38_v41 = vld [vmem:[%s831_s2] sm:$0xff] }
  0x1d   :  { %v393_v42 = vpack.c.bf16 %v38_v41, %v38_v41  ;;  %v510_v45 = vld [vmem:[%s833_s4 + $0x1] ss:$0 sm:$0xff]  ;;  %v528_v53 = vld [vmem:[%s833_s4 + $0x3] ss:$0 sm:$0xff]  ;;  %v519_v59 = vld [vmem:[%s833_s4 + $0x2] ss:$0 sm:$0xff]  ;;  %p688_p12 = pnand %p687_p11, %p681_p8 }
  0x1e   :  { %564 = vmatmul.mubr.msk.bf16.vlgmr.msra.gmra.mrb[0].mxu0 %vm106_vm1, %v37_v6  ;;  %s713_s4 = smov 96  }
  0x1f   :  { %609 = vmatprep.mubr.msk.bf16.mxu0 %vm711_vm0, %v710_v1  ;;  %594 = vmatpush3.bf16.msra.mxu0 %v644_v24 }
  0x20   :  { %595 = vmatprep.subr.bf16.mxu0 %v710_v1 }
  0x23   :  { %596 = vmatpush3.bf16.msra.mxu0 %v645_v25 }
  0x24   :  { %597 = vmatprep.subr.bf16.mxu0 %v710_v1 }
  0x27   :  { %598 = vmatpush3.bf16.msra.mxu0 %v646_v26 }
  0x28   :  { %599 = vmatprep.subr.bf16.mxu0 %v710_v1 }
  0x2b   :  { %600 = vmatpush3.bf16.msra.mxu0 %v647_v27 }
  0x2c   :  { %601 = vmatprep.subr.bf16.mxu0 %v710_v1 }
  0x2f   :  { %602 = vmatpush3.bf16.msra.mxu0 %v648_v28 }
  0x30   :  { %603 = vmatprep.subr.bf16.mxu0 %v710_v1 }
  0x33   :  { %604 = vmatpush3.bf16.msra.mxu0 %v649_v29 }
  0x34   :  { %605 = vmatprep.subr.bf16.mxu0 %v710_v1 }
  0x37   :  { %606 = vmatpush3.bf16.msra.mxu0 %v650_v43 }
  0x38   :  { %607 = vmatprep.subr.bf16.mxu0 %v710_v1 }
  0x3b   :  { %608 = vmatpush3.bf16.msra.mxu0 %v651_v44 }
  0x94   :  { %v43_v9 = vpop.permute.xlu0 %42 }
  0x95   :  { %vm44_vm2 = vcmp.eq.s32.totalorder %v40_v8, %v43_v9 }
  0x96   :  { %v503_v10 = vsel %vm44_vm2, 1.0, %v710_v1 }
  0x97   :  { %v47_v12 = vpack.c.bf16 %v503_v10, %v503_v10 }
  0x99   :  { %570 = vmatmul.mubr.msk.bf16.vlgmr.msra.gmra.mrb[0].mxu1 %vm156_vm3, %v47_v12 }
  0x9a   :  { %574 = vmatpush3.bf16.msra.mxu1 %v634_v11  ;;  %589 = vmatprep.mubr.msk.bf16.mxu1 %vm711_vm0, %v710_v1 }
  0x9b   :  { %575 = vmatprep.subr.bf16.mxu1 %v710_v1 }
  0x9e   :  { %576 = vmatpush3.bf16.msra.mxu1 %v635_v13 }
  0x9f   :  { %577 = vmatprep.subr.bf16.mxu1 %v710_v1 }
  0xa2   :  { %578 = vmatpush3.bf16.msra.mxu1 %v636_v14 }
  0xa3   :  { %579 = vmatprep.subr.bf16.mxu1 %v710_v1 }
  0xa6   :  { %580 = vmatpush3.bf16.msra.mxu1 %v637_v15 }
  0xa7   :  { %581 = vmatprep.subr.bf16.mxu1 %v710_v1 }
  0xaa   :  { %582 = vmatpush3.bf16.msra.mxu1 %v638_v16 }
  0xab   :  { %583 = vmatprep.subr.bf16.mxu1 %v710_v1 }
  0xae   :  { %584 = vmatpush3.bf16.msra.mxu1 %v639_v17 }
  0xaf   :  { %585 = vmatprep.subr.bf16.mxu1 %v710_v1 }
  0xb2   :  { %586 = vmatpush3.bf16.msra.mxu1 %v640_v18 }
  0xb3   :  { %587 = vmatprep.subr.bf16.mxu1 %v710_v1 }
  0xb6   :  { %588 = vmatpush3.bf16.msra.mxu1 %v641_v19 }
  0xb7   :  { %613 = vmatprep.subr.bf16.mxu1 %v710_v1 }
  0xf1   :  { %v144_v20 = vpop.f32.mrb[0].mxu0 }
  0xf2   :  { %v565_v21 = vpop.f32.mrb[1].mxu0 }
  0xf3   :  { %v147_v22 = vpop.f32.mrb[2].mxu0 }
  0xf4   :  { %v566_v23 = vpop.f32.mrb[3].mxu0 }
 0x16c   :  { %v194_v31 = vpop.f32.mrb[0].mxu1 }
 0x16d   :  { %v195_v32 = vadd.f32 %v194_v31, %v144_v20  ;;  %v571_v33 = vpop.f32.mrb[1].mxu1 }
 0x16e   :  { %v197_v34 = vpop.f32.mrb[2].mxu1 }
 0x16f   :  { %v204_v35 = vadd.f32 %v509_v30, %v195_v32  ;;  %v572_v36 = vpop.f32.mrb[3].mxu1 }
 0x171   :  { %v205_v37 = vmax.f32 %v204_v35, 0.0 }
 0x173   :  { %v206_v39 = vpack.c.bf16 %v205_v37, %v205_v37 }
 0x175   :  { %590 = vmatmul.mubr.bf16.vlgmr.msra.gmra.mrb[4].mxu1 %v206_v39 }
 0x176   :  { %614 = vmatpush3.bf16.msra.mxu1 %v642_v38  ;;  %617 = vmatprep.mubr.msk.bf16.mxu1 %vm711_vm0, %v710_v1 }
 0x177   :  { %615 = vmatprep.subr.bf16.mxu1 %v710_v1 }
 0x17a   :  { %616 = vmatpush3.bf16.msra.mxu1 %v643_v40 }
 0x17d   :  { %618 = vmatmul.mubr.msk.bf16.vlgmr.msra.gmra.mrb[8].mxu1 %vm106_vm1, %v393_v42 }
 0x248   :  { %v293_v46 = vpop.f32.mrb[4].mxu1 }
 0x249   :  { %v294_v47 = vadd.f32 %v510_v45, %v293_v46  ;;  %v591_v48 = vpop.f32.mrb[5].mxu1 }
 0x24a   :  { %v296_v49 = vpop.f32.mrb[6].mxu1 }
 0x24b   :  { %v299_v50 = vmax.f32 %v294_v47, 0.0  ;;  %v592_v51 = vpop.f32.mrb[7].mxu1 }
 0x24d   :  { %v300_v52 = vpack.c.bf16 %v299_v50, %v299_v50 }
 0x24f   :  { %610 = vmatmul.mubr.bf16.vlgmr.msra.gmra.mrb[4].mxu0 %v300_v52 }
 0x250   :  { %v447_v54 = vpop.f32.mrb[8].mxu1 }
 0x251   :  { %v448_v55 = vadd.f32 %v528_v53, %v447_v54  ;;  %v619_v56 = vpop.f32.mrb[9].mxu1 }
 0x252   :  { %v450_v57 = vpop.f32.mrb[10].mxu1 }
 0x253   :  { %461 = vrot.lane.b32.xlu0 %v448_v55, %s707_s28  ;;  %v620_v58 = vpop.f32.mrb[11].mxu1 }
 0x257   :  { %478 = vrot.lane.b32.xlu0 %v38_v41, %s712_s15 }
 0x2c5   :  { %v462_v6 = vpop.permute.xlu0 %461 }
 0x2c9   :  { %v479_v11 = vpop.permute.xlu0 %478 }
 0x322   :  { %v387_v60 = vpop.f32.mrb[4].mxu0 }
 0x323   :  { %v388_v61 = vadd.f32 %v519_v59, %v387_v60  ;;  %v611_v62 = vpop.f32.mrb[5].mxu0 }
 0x324   :  { %v390_v63 = vpop.f32.mrb[6].mxu0 }
 0x325   :  { %v453_v0 = vadd.f32 %v448_v55, %v388_v61  ;;  %v612_v1 = vpop.f32.mrb[7].mxu0 }
 0x327   :  { %v532_v2 = vmul.f32 -1.442695, %v453_v0 }
 0x329   :  { %652 = vpow2.f32 %v532_v2 }
 0x333   :  { %v653_v3 = vpop.eup %652 }
 0x334   :  { %v457_v4 = vadd.f32 1.0, %v653_v3 }
 0x336   :  { %654 = vrcp.f32 %v457_v4 }
 0x340   :  { %v655_v5 = vpop.eup %654 }
 0x341   :  { %v464_v7 = vmul.f32 %v655_v5, %v462_v6  ;;  %v471_v12 = vsub.f32 1.0, %v655_v5  ;;  %v481_v14 = vmul.f32 %v655_v5, %v479_v11 }
 0x343   :  { %466 = vrot.lane.b32.xlu1 %v464_v7, %s707_s28 }
 0x3b5   :  { %v467_v8 = vpop.permute.xlu1 %466 }
 0x3b6   :  { %v469_v9 = vadd.f32 %v467_v8, %v388_v61 }
 0x3b8   :  { %656 = vtanh.f32 %v469_v9 }
 0x3c2   :  { %v657_v10 = vpop.eup %656 }
 0x3c3   :  { %473 = vrot.lane.b32.xlu1 %v657_v10, %s713_s4 }
 0x435   :  { %v474_v13 = vpop.permute.xlu1 %473 }
 0x436   :  { %v476_v15 = vmul.f32 %v474_v13, %v471_v12 }
 0x438   :  { %v482_v16 = vadd.f32 %v481_v14, %v476_v15 }
 0x43a   :  { %484 = vrot.lane.b32.xlu1 %v482_v16, %s713_s4 }
 0x4ac   :  { %v485_v17 = vpop.permute.xlu1 %484 }
 0x4ad   :  { %487 = vst.msk [vmem:[#allocation5] sm:$0xff] %vm106_vm1, %v485_v17 }
 0x4ae   :  { %691 = shalt.err (!%p688_p12)
}
 0x4af   :  { %s692_s23 = scalar_lea.hbm %s834_s5, 128 }
 0x4b0   :  { %p693_p13 = scmp.ne.s32.totalorder %s834_s5, %s692_s23  ;;  %p696_p0 = scmp.lt.u32.totalorder %s692_s23, %s834_s5 }
 0x4b2   :  { %p698_p1 = pnand %p696_p0, %p693_p13 }
 0x4b4   :  { %701 = shalt.err (!%p698_p1)
}
 0x4b5   :  { %497 = dma.vmem_to_hbm [thread:$0]  %s495_s19, 128, %s834_s5, [#allocation4]  }
 0x4b6   :  { %704 = dma.done.wait [#allocation4], 128  }
 0x4b7   :  { %705 = vsyncadd [#allocation4], 4294967168 }
 0x4b8   :  { %501 = vsyncpa [#allocation3], 1 }
 0x4b9   :  { %502 = vsyncpa [#allocation4], 1 }

</bundles_post_ra>
